<compile_context>
chip_gen: v5e
topology: v5e:2x2
jax: 0.10.0
libtpu: 0.0.40
codegen_flags: <defaults>
</compile_context>

<pallas_src>
import functools

import jax
import jax.numpy as jnp
import numpy as np
from jax.experimental import pallas as pl
from jax.experimental.pallas import tpu as pltpu


# ----------------------------------------------------------------------------
# Parameter construction (mirrors RandomBlur.__init__ / GaussianKernel)
# ----------------------------------------------------------------------------
def gaussian_kernel(sigma: float, width: int) -> np.ndarray:
    """Normalized 2D Gaussian kernel (width x width), same as tensormonk."""
    half = width // 2
    x, y = np.meshgrid(np.linspace(-half, half, width),
                       np.linspace(-half, half, width), indexing="xy")
    w = np.exp(-(x ** 2 + y ** 2) / (2.0 * (sigma ** 2)))
    w /= np.sum(w)
    return w.astype(np.float32)


def build_random_blur_state(width: int = 5, seed: int = 0):
    """Deterministic equivalent of RandomBlur.__init__ buffers."""
    if width % 2 == 0:
        width += 1
    pad = width // 2
    sigmas = np.arange(1.0, 6.0, 0.1)                      # 50 sigmas
    kernels = np.stack([gaussian_kernel(s, width) for s in sigmas], axis=0)
    # rand_idx: each kernel index repeated 100x, then permuted (deterministic).
    rand_idx = np.repeat(np.arange(kernels.shape[0]), 100)
    perm = jax.random.permutation(jax.random.PRNGKey(seed), rand_idx.shape[0])
    rand_idx = rand_idx[np.asarray(perm)]
    return jnp.asarray(kernels), jnp.asarray(rand_idx), pad, width


# ----------------------------------------------------------------------------
# Pallas kernel: separable "same" Gaussian blur of a block of image planes.
# ----------------------------------------------------------------------------
def _blur_kernel(g_ref, x_ref, o_ref, xpad_ref, *, width: int, pad: int):
    # g_ref    : SMEM (width,) f32           1D Gaussian factor (outer(g,g) == 2D kernel)
    # x_ref    : VMEM (bp, H, W)             unpadded input planes
    # o_ref    : VMEM (bp, H, W)             blurred output planes
    # xpad_ref : VMEM (bp, H+2p, W+2p)       zero-padded copy of the block (fused pad)
    bp, h, w = o_ref.shape
    _, hp, wp = xpad_ref.shape
    zdt = xpad_ref.dtype

    # --- fused zero padding: zero only the halo frame, interior is overwritten.
    # (Halo re-zeroed every step: with a "parallel" grid axis each TensorCore owns
    #  its own scratch, so a "zero only at step 0" pattern would be unsafe.)
    xpad_ref[:, 0:pad, :] = jnp.zeros((bp, pad, wp), zdt)
    xpad_ref[:, pad + h:hp, :] = jnp.zeros((bp, hp - (pad + h), wp), zdt)
    xpad_ref[:, pad:pad + h, 0:pad] = jnp.zeros((bp, h, pad), zdt)
    xpad_ref[:, pad:pad + h, pad + w:wp] = jnp.zeros((bp, h, wp - (pad + w)), zdt)
    xpad_ref[:, pad:pad + h, pad:pad + w] = x_ref[...].astype(zdt)

    # --- horizontal pass (lane axis): row[b,r,v] = sum_j g[j] * xpad[b,r,v+j]
    # g is f32, so the accumulation is f32 even when the scratch holds bf16.
    row = xpad_ref[:, :, 0:w] * g_ref[0]
    for j in range(1, width):                   # static unroll, width MACs
        row = row + xpad_ref[:, :, j:j + w] * g_ref[j]
    # row: (bp, hp, w) f32 traced value — no VMEM scratch round trip.
    # Halo rows of `row` are exactly 0 (they come from all-zero padded rows).

    # --- vertical pass (sublane axis): out[b,u,v] = sum_i g[i] * row[b,u+i,v]
    out = row[:, 0:h, :] * g_ref[0]
    for i in range(1, width):                   # static unroll, width MACs
        out = out + row[:, i:i + h, :] * g_ref[i]
    o_ref[...] = out.astype(o_ref.dtype)


def _pick_block_planes(p: int, h: int, w: int, hp: int, wp: int,
                       io_itemsize: int, pad_itemsize: int,
                       budget_bytes: int = 40 << 20,
                       min_grid_steps: int = 2) -> int:
    """Largest divisor of p fitting the VMEM budget while keeping >= 2 grid steps.

    Keeping at least two grid steps lets the "parallel" plane-batch axis be split
    across v7x's two TensorCores; on v5e/v6e (1 TC) the extra step costs ~0.35 us.
    """
    def footprint(bp):
        io = 2 * 2 * bp * h * w * io_itemsize         # in + out, double-buffered
        scratch = bp * hp * wp * pad_itemsize         # fused-padding scratch
        live = bp * hp * w * 4                        # horiz intermediate, if spilled
        return io + scratch + live

    max_bp = p if p < min_grid_steps else max(1, p // min_grid_steps)
    best = 1
    for d in range(1, max_bp + 1):
        if p % d == 0 and footprint(d) <= budget_bytes:
            best = d
    return best


def random_blur_forward(x: jax.Array, kernels: jax.Array, rand_idx: jax.Array,
                        track: int, pad: int, width: int,
                        block_planes: int | None = None) -> jax.Array:
    """Equivalent of RandomBlur.forward for a 4D NCHW tensor."""
    n, c, h, w = x.shape
    p = n * c
    hp, wp = h + 2 * pad, w + 2 * pad

    # Kernel for this call (same kernel for the whole batch / all channels).
    k2d = kernels[rand_idx[track]]                              # (width, width)
    # The Gaussian kernel is rank-1: k2d == outer(g, g).  Recover the 1D factor
    # from the centre row so the blur runs as two 1D passes (exact).
    g = (k2d[pad, :] / jnp.sqrt(k2d[pad, pad])).astype(jnp.float32)   # (width,)

    xr = x.reshape(p, h, w)                         # free reshape, no pad/copy

    # bf16 inputs keep a bf16 padded scratch (half the VMEM/vld traffic on
    # v6e/v7x); everything else promotes to f32.  Accumulation is always f32.
    pad_dtype = jnp.bfloat16 if x.dtype == jnp.bfloat16 else jnp.float32

    if block_planes is None:
        block_planes = _pick_block_planes(
            p, h, w, hp, wp, x.dtype.itemsize, jnp.dtype(pad_dtype).itemsize)
    assert p % block_planes == 0, (
        f"block_planes={block_planes} must divide N*C={p}; remainder planes "
        "would otherwise be silently dropped")
    grid = (p // block_planes,)

    flops = 4 * width * p * h * w                   # mul+add per tap, two passes
    bytes_accessed = 2 * p * h * w * x.dtype.itemsize

    out = pl.pallas_call(
        functools.partial(_blur_kernel, width=width, pad=pad),
        grid=grid,
        in_specs=[
            pl.BlockSpec(memory_space=pltpu.MemorySpace.SMEM),           # 1D weights
            pl.BlockSpec((block_planes, h, w), lambda i: (i, 0, 0)),     # plane block
        ],
        out_specs=pl.BlockSpec((block_planes, h, w), lambda i: (i, 0, 0)),
        out_shape=jax.ShapeDtypeStruct((p, h, w), x.dtype),
        scratch_shapes=[
            pltpu.VMEM((block_planes, hp, wp), pad_dtype),   # fused zero-padding buffer
        ],
        compiler_params=pltpu.CompilerParams(
            dimension_semantics=("parallel",),               # v7x: split plane batches
            vmem_limit_bytes=48 * 1024 * 1024),
        cost_estimate=pl.CostEstimate(flops=flops, transcendentals=0,
                                      bytes_accessed=bytes_accessed),
    )(g, xr)
    return out.reshape(n, c, h, w)


# ----------------------------------------------------------------------------
# Demo / correctness check
# ----------------------------------------------------------------------------
if __name__ == "__main__":
    kernels, rand_idx, pad, width = build_random_blur_state(width=5, seed=0)

    key = jax.random.PRNGKey(0)
    n, c, h, w = 2, 4, 16, 16
    x = jax.random.normal(key, (n, c, h, w), dtype=jnp.float32)

    track = 0  # RandomBlur uses an internal counter; first call => track 0
    out = random_blur_forward(x, kernels, rand_idx, track, pad, width)
    out = jax.block_until_ready(out)

    # Reference: depthwise conv2d with the same 2D kernel per channel (PyTorch semantics).
    k2d = kernels[rand_idx[track]]
    k_depthwise = jnp.tile(k2d[None, None, :, :], (c, 1, 1, 1))     # (C,1,kh,kw)
    ref = jax.lax.conv_general_dilated(
        x, k_depthwise, window_strides=(1, 1),
        padding=((pad, pad), (pad, pad)),
        dimension_numbers=("NCHW", "OIHW", "NCHW"),
        feature_group_count=c)
    ref = jax.block_until_ready(ref)

    np.testing.assert_allclose(np.asarray(out), np.asarray(ref),
                               rtol=1e-5, atol=1e-5)
    assert out.shape == (n, c, h, w) and out.dtype == x.dtype
    print("KERNEL_OK")
</pallas_src>

<mosaic_0001>
module attributes {stable_mosaic.version = 11 : i64} {
  func.func @_blur_kernel(%arg0: i32, %arg1: memref<5xf32, #tpu.memory_space<smem>>, %arg2: memref<4x16x16xf32, #tpu.memory_space<vmem>>, %arg3: memref<4x16x16xf32, #tpu.memory_space<vmem>>, %arg4: memref<4x20x20xf32, #tpu.memory_space<vmem>>) attributes {dimension_semantics = [#tpu.dimension_semantics<parallel>], iteration_bounds = array<i64: 2>, scalar_prefetch = 0 : i64, scratch_operands = 1 : i64, tpu.core_type = #tpu.core_type<tc>, window_params = [{transform_indices = @transform_0, window_bounds = array<i64: 5>}, {transform_indices = @transform_1, window_bounds = array<i64: 4, 16, 16>}, {transform_indices = @transform_2, window_bounds = array<i64: 4, 16, 16>}]} {
    %cst = arith.constant 0.000000e+00 : f32
    %0 = vector.broadcast %cst : f32 to vector<4x2x20xf32>
    %c0 = arith.constant 0 : index
    %c0_0 = arith.constant 0 : index
    %c0_1 = arith.constant 0 : index
    %1 = vector.load %arg4[%c0, %c0_0, %c0_1] : memref<4x20x20xf32, #tpu.memory_space<vmem>>, vector<4x2x20xf32>
    tpu.vector_store %arg4[%c0, %c0_0, %c0_1], %0 {strides = array<i32>} : memref<4x20x20xf32, #tpu.memory_space<vmem>>, vector<4x2x20xf32>,
    %cst_2 = arith.constant 0.000000e+00 : f32
    %2 = vector.broadcast %cst_2 : f32 to vector<4x2x20xf32>
    %c0_3 = arith.constant 0 : index
    %c18 = arith.constant 18 : index
    %c0_4 = arith.constant 0 : index
    %3 = vector.load %arg4[%c0_3, %c18, %c0_4] : memref<4x20x20xf32, #tpu.memory_space<vmem>>, vector<4x2x20xf32>
    tpu.vector_store %arg4[%c0_3, %c18, %c0_4], %2 {strides = array<i32>} : memref<4x20x20xf32, #tpu.memory_space<vmem>>, vector<4x2x20xf32>,
    %cst_5 = arith.constant 0.000000e+00 : f32
    %4 = vector.broadcast %cst_5 : f32 to vector<4x16x2xf32>
    %c0_6 = arith.constant 0 : index
    %c2 = arith.constant 2 : index
    %c0_7 = arith.constant 0 : index
    %5 = vector.load %arg4[%c0_6, %c2, %c0_7] : memref<4x20x20xf32, #tpu.memory_space<vmem>>, vector<4x16x2xf32>
    tpu.vector_store %arg4[%c0_6, %c2, %c0_7], %4 {strides = array<i32>} : memref<4x20x20xf32, #tpu.memory_space<vmem>>, vector<4x16x2xf32>,
    %cst_8 = arith.constant 0.000000e+00 : f32
    %6 = vector.broadcast %cst_8 : f32 to vector<4x16x2xf32>
    %c0_9 = arith.constant 0 : index
    %c2_10 = arith.constant 2 : index
    %c18_11 = arith.constant 18 : index
    %7 = vector.load %arg4[%c0_9, %c2_10, %c18_11] : memref<4x20x20xf32, #tpu.memory_space<vmem>>, vector<4x16x2xf32>
    tpu.vector_store %arg4[%c0_9, %c2_10, %c18_11], %6 {strides = array<i32>} : memref<4x20x20xf32, #tpu.memory_space<vmem>>, vector<4x16x2xf32>,
    %c0_12 = arith.constant 0 : index
    %c0_13 = arith.constant 0 : index
    %c0_14 = arith.constant 0 : index
    %8 = vector.load %arg2[%c0_12, %c0_13, %c0_14] : memref<4x16x16xf32, #tpu.memory_space<vmem>>, vector<4x16x16xf32>
    %c0_15 = arith.constant 0 : index
    %c2_16 = arith.constant 2 : index
    %c2_17 = arith.constant 2 : index
    %9 = vector.load %arg4[%c0_15, %c2_16, %c2_17] : memref<4x20x20xf32, #tpu.memory_space<vmem>>, vector<4x16x16xf32>
    tpu.vector_store %arg4[%c0_15, %c2_16, %c2_17], %8 {strides = array<i32>} : memref<4x20x20xf32, #tpu.memory_space<vmem>>, vector<4x16x16xf32>,
    %c0_18 = arith.constant 0 : index
    %c0_19 = arith.constant 0 : index
    %c0_20 = arith.constant 0 : index
    %10 = vector.load %arg4[%c0_18, %c0_19, %c0_20] : memref<4x20x20xf32, #tpu.memory_space<vmem>>, vector<4x20x16xf32>
    %c0_21 = arith.constant 0 : index
    %11 = memref.load %arg1[%c0_21] : memref<5xf32, #tpu.memory_space<smem>>
    %12 = vector.broadcast %11 : f32 to vector<4x20x16xf32>
    %13 = arith.mulf %10, %12 : vector<4x20x16xf32>
    %c0_22 = arith.constant 0 : index
    %c0_23 = arith.constant 0 : index
    %c1 = arith.constant 1 : index
    %14 = vector.load %arg4[%c0_22, %c0_23, %c1] : memref<4x20x20xf32, #tpu.memory_space<vmem>>, vector<4x20x16xf32>
    %c1_24 = arith.constant 1 : index
    %15 = memref.load %arg1[%c1_24] : memref<5xf32, #tpu.memory_space<smem>>
    %16 = vector.broadcast %15 : f32 to vector<4x20x16xf32>
    %17 = arith.mulf %14, %16 : vector<4x20x16xf32>
    %18 = arith.addf %13, %17 : vector<4x20x16xf32>
    %c0_25 = arith.constant 0 : index
    %c0_26 = arith.constant 0 : index
    %c2_27 = arith.constant 2 : index
    %19 = vector.load %arg4[%c0_25, %c0_26, %c2_27] : memref<4x20x20xf32, #tpu.memory_space<vmem>>, vector<4x20x16xf32>
    %c2_28 = arith.constant 2 : index
    %20 = memref.load %arg1[%c2_28] : memref<5xf32, #tpu.memory_space<smem>>
    %21 = vector.broadcast %20 : f32 to vector<4x20x16xf32>
    %22 = arith.mulf %19, %21 : vector<4x20x16xf32>
    %23 = arith.addf %18, %22 : vector<4x20x16xf32>
    %c0_29 = arith.constant 0 : index
    %c0_30 = arith.constant 0 : index
    %c3 = arith.constant 3 : index
    %24 = vector.load %arg4[%c0_29, %c0_30, %c3] : memref<4x20x20xf32, #tpu.memory_space<vmem>>, vector<4x20x16xf32>
    %c3_31 = arith.constant 3 : index
    %25 = memref.load %arg1[%c3_31] : memref<5xf32, #tpu.memory_space<smem>>
    %26 = vector.broadcast %25 : f32 to vector<4x20x16xf32>
    %27 = arith.mulf %24, %26 : vector<4x20x16xf32>
    %28 = arith.addf %23, %27 : vector<4x20x16xf32>
    %c0_32 = arith.constant 0 : index
    %c0_33 = arith.constant 0 : index
    %c4 = arith.constant 4 : index
    %29 = vector.load %arg4[%c0_32, %c0_33, %c4] : memref<4x20x20xf32, #tpu.memory_space<vmem>>, vector<4x20x16xf32>
    %c4_34 = arith.constant 4 : index
    %30 = memref.load %arg1[%c4_34] : memref<5xf32, #tpu.memory_space<smem>>
    %31 = vector.broadcast %30 : f32 to vector<4x20x16xf32>
    %32 = arith.mulf %29, %31 : vector<4x20x16xf32>
    %33 = arith.addf %28, %32 : vector<4x20x16xf32>
    %34 = vector.extract_strided_slice %33 {offsets = [0, 0, 0], sizes = [4, 16, 16], strides = [1, 1, 1]} : vector<4x20x16xf32> to vector<4x16x16xf32>
    %c0_35 = arith.constant 0 : index
    %35 = memref.load %arg1[%c0_35] : memref<5xf32, #tpu.memory_space<smem>>
    %36 = vector.broadcast %35 : f32 to vector<4x16x16xf32>
    %37 = arith.mulf %34, %36 : vector<4x16x16xf32>
    %38 = vector.extract_strided_slice %33 {offsets = [0, 1, 0], sizes = [4, 16, 16], strides = [1, 1, 1]} : vector<4x20x16xf32> to vector<4x16x16xf32>
    %c1_36 = arith.constant 1 : index
    %39 = memref.load %arg1[%c1_36] : memref<5xf32, #tpu.memory_space<smem>>
    %40 = vector.broadcast %39 : f32 to vector<4x16x16xf32>
    %41 = arith.mulf %38, %40 : vector<4x16x16xf32>
    %42 = arith.addf %37, %41 : vector<4x16x16xf32>
    %43 = vector.extract_strided_slice %33 {offsets = [0, 2, 0], sizes = [4, 16, 16], strides = [1, 1, 1]} : vector<4x20x16xf32> to vector<4x16x16xf32>
    %c2_37 = arith.constant 2 : index
    %44 = memref.load %arg1[%c2_37] : memref<5xf32, #tpu.memory_space<smem>>
    %45 = vector.broadcast %44 : f32 to vector<4x16x16xf32>
    %46 = arith.mulf %43, %45 : vector<4x16x16xf32>
    %47 = arith.addf %42, %46 : vector<4x16x16xf32>
    %48 = vector.extract_strided_slice %33 {offsets = [0, 3, 0], sizes = [4, 16, 16], strides = [1, 1, 1]} : vector<4x20x16xf32> to vector<4x16x16xf32>
    %c3_38 = arith.constant 3 : index
    %49 = memref.load %arg1[%c3_38] : memref<5xf32, #tpu.memory_space<smem>>
    %50 = vector.broadcast %49 : f32 to vector<4x16x16xf32>
    %51 = arith.mulf %48, %50 : vector<4x16x16xf32>
    %52 = arith.addf %47, %51 : vector<4x16x16xf32>
    %53 = vector.extract_strided_slice %33 {offsets = [0, 4, 0], sizes = [4, 16, 16], strides = [1, 1, 1]} : vector<4x20x16xf32> to vector<4x16x16xf32>
    %c4_39 = arith.constant 4 : index
    %54 = memref.load %arg1[%c4_39] : memref<5xf32, #tpu.memory_space<smem>>
    %55 = vector.broadcast %54 : f32 to vector<4x16x16xf32>
    %56 = arith.mulf %53, %55 : vector<4x16x16xf32>
    %57 = arith.addf %52, %56 : vector<4x16x16xf32>
    %c0_40 = arith.constant 0 : index
    %c0_41 = arith.constant 0 : index
    %c0_42 = arith.constant 0 : index
    %58 = vector.load %arg3[%c0_40, %c0_41, %c0_42] : memref<4x16x16xf32, #tpu.memory_space<vmem>>, vector<4x16x16xf32>
    tpu.vector_store %arg3[%c0_40, %c0_41, %c0_42], %57 {strides = array<i32>} : memref<4x16x16xf32, #tpu.memory_space<vmem>>, vector<4x16x16xf32>,
    return
  }
  func.func @transform_0(%arg0: i32) -> i32 {
    %c0_i32 = arith.constant 0 : i32
    %c0_i32_0 = arith.constant 0 : i32
    return %c0_i32 : i32
  }
  func.func @transform_1(%arg0: i32) -> (i32, i32, i32) {
    %c0_i32 = arith.constant 0 : i32
    %c0_i32_0 = arith.constant 0 : i32
    %c0_i32_1 = arith.constant 0 : i32
    return %arg0, %c0_i32, %c0_i32_0 : i32, i32, i32
  }
  func.func @transform_2(%arg0: i32) -> (i32, i32, i32) {
    %c0_i32 = arith.constant 0 : i32
    %c0_i32_0 = arith.constant 0 : i32
    %c0_i32_1 = arith.constant 0 : i32
    return %arg0, %c0_i32, %c0_i32_0 : i32, i32, i32
  }
}

</mosaic_0001>

<bundles_post_ra>
// kernel: tpu_custom_call.1
= control target key start
LH: loop header
LB: loop body
LE: loop exit
PB: predicated region body
PF: predicated region fallthrough
CT: control target
= control target key end

     0   :  { %7 = vsyncpa [#allocation6], 0  ;;  %s1743_s0 = inlined_call_operand.hbm [shape: f32[5], index: 0, kind: input, shape index: {}]   ;;  %s1744_s1 = inlined_call_operand.hbm [shape: f32[8,16,16], index: 1, kind: input, shape index: {}]   ;;  %s1745_s2 = inlined_call_operand.hbm [shape: f32[8,16,16], index: 2, kind: output, shape index: {}]  }
   0x1   :  { %8 = vsyncpa [#allocation4], 0 }
   0x2   :  { %10 = vsyncpa [#allocation4 + $0x1], 0 }
   0x3   :  { %11 = vsyncpa [#allocation5], 0 }
   0x4   :  { %13 = vsyncpa [#allocation5 + $0x1], 0  ;;  %s1178_s9 = smov 0   ;;  %s1180_s10 = smov 0  }
   0x5   :  { %s1182_s11 = smov 0   ;;  %s1184_s12 = smov 0  }
   0x6 LB: > { %s1199_s13 = sadd.s32 4294967295, %s1150_s12   ;;  %s942_s14 = sadd.s32 4294967294, %s1150_s12   ;;  %s1150_s12 = sphi %s1184_s12, %s1756_s12   ;;  %s1146_s11 = sphi %s1182_s11, %s1755_s11   ;;  %s1142_s10 = sphi %s1180_s10, %s1754_s10   ;;  %s1138_s9 = sphi %s1178_s9, %s1753_s9  }
   0x7   : > { %s1203_s15 = sadd.s32 1, %s1150_s12   ;;  %s47_s16 = sadd.s32 1, %s1146_s11 }
   0x8   : > { %s44_s17 = ssub.s32 %s1150_s12, %s1203_s15  ;;  %p54_p0 = scmp.ne.s32.totalorder %s1146_s11, %s1142_s10 }
   0x9   : > { %p45_p1 = scmp.eq.s32.totalorder %s44_s17, 0  ;;  %p55_p2 = scmp.eq.s32.totalorder %s1150_s12, 0 }
   0xa   : > { %p60_p3 = scmp.ne.s32.totalorder %s1142_s10, %s1138_s9  ;;  %p61_p4 = scmp.eq.s32.totalorder %s1199_s13, 0 }
   0xb   : > { %s1215_s18 = scalar_select %p45_p1, %s1146_s11, %s47_s16  }
   0xc   : > { %p1217_p5 = por %p55_p2, %p54_p0  ;;  %p1223_p6 = por %p61_p4, %p60_p3 }
   0xd   : > { %p84_p7 = scmp.eq.s32.totalorder %s1199_s13, 1  ;;  %p90_p8 = scmp.eq.s32.totalorder %s942_s14, 1 }
   0xe   : > { %p943_p9 = scmp.ge.s32.totalorder %s1150_s12, 1  ;;  %p97_p10 = scmp.lt.s32.totalorder %s1150_s12, 3 }
   0xf   : > { %p1230_p11 = por %p84_p7, %p54_p0  ;;  %p1234_p12 = por %p90_p8, %p60_p3 }
  0x10   : > { %p1238_p13 = pnand %p943_p9, %p97_p10  ;;  %s109_s26 = sshll.u32 %s1743_s0, 4  ;;  %s110_s26 = int_to_ptr.hbm [resolvable:$true] %s109_s26 }
  0x11   : > { %p989_p2 = scmp.lt.s32.totalorder %s1150_s12, 2  ;;  %s120_s27 = sand.u32 1, %s1146_s11  }
  0x12   : > { %p976_p1 = pneg %p1238_p13  ;;  %s946_s29 = sshll.u32 %s120_s27, 6 }
  0x13   : > { %p1254_p3 = pnand %p989_p2, %p1217_p5  ;;  %s1152_s30 = smov [#allocation3]  }
  0x14   : > { %p977_p7 = pnand %p976_p1, %p61_p4  ;;  %s965_s3 = sshll.u32 %s1150_s12, 6 }
  0x15   : > { %s124_s4 = scalar_lea.vmem [#allocation7], %s946_s29  ;;  %s130_s8 = scalar_lea.hbm %s1744_s1, %s965_s3 }
  0x16   : > { %979 = dma.hbm_to_smem (!%p977_p7), %s110_s26, 16, %s1152_s30, [#allocation6]  }
  0x17   : > { %s133_s5 = sshll.u32 %s124_s4, 4  ;;  %s131_s14 = sshll.u32 %s130_s8, 4  ;;  %s134_s5 = int_to_ptr.vmem [resolvable:$true] %s133_s5  ;;  %s132_s14 = int_to_ptr.hbm [resolvable:$true] %s131_s14 }
  0x18   : > { %s121_s16 = scalar_lea.sflag [#allocation4], %s120_s27  ;;  %s1050_s17 = sshra.s32 %s132_s14, 4  ;;  %s1051_s17 = int_to_ptr.hbm [resolvable:$true] %s1050_s17 }
  0x19   : > { %s1052_s19 = scalar_lea.hbm %s1051_s17, 64  ;;  %p1054_p8 = pneg %p1254_p3 }
  0x1a   : > { %p1053_p5 = scmp.ne.s32.totalorder %s1051_s17, %s1052_s19  ;;  %s1057_s26 = scalar_lea.hbm %s1744_s1, 128 }
  0x1b   : > { %p1058_p1 = scmp.lt.s32.totalorder %s1051_s17, %s1744_s1  ;;  %p1059_p2 = scmp.lt.s32.totalorder %s1057_s26, %s1052_s19 }
  0x1c   : > { %p1055_p9 = pnand %p1054_p8, %p1053_p5 }
  0x1d   : > { %p1060_p7 = por %p1059_p2, %p1058_p1 }
  0x1e   : > { %p1056_p10 = pneg %p1055_p9 }
  0x20   : > { %p1061_p0 = pnand %p1060_p7, %p1056_p10 }
  0x22   : > { %1064 = shalt.err (!%p1061_p0)
}
  0x23   : > { %s1153_s27 = smov 128   ;;  %s1154_s3 = smov 8  }
  0x24   : > { %983 = dma.hbm_to_vmem [thread:$0]  (!%p1254_p3), %s132_s14, 1024, %s134_s5, %s121_s16, %s1153_s27, %s1153_s27, %s1154_s3  }
  0x25   : > { %145 = sbr.rel (%p1238_p13) target bundleno = 442 (0x1ba), region = 28 }
  0x2a   : > { %1125 = dma.done.wait (%p61_p4), [#allocation6], 16  }
  0x2b   : > { %1127 = vsyncadd (%p61_p4), [#allocation6], 4294967280  ;;  %s1279_s4 = sand.u32 1, %s1142_s10  }
  0x2c   : > { %s952_s6 = sshll.u32 %s1279_s4, 6  ;;  %s153_s7 = scalar_lea.sflag [#allocation4], %s1279_s4 }
  0x2d   : > { %s156_s28 = scalar_lea.vmem [#allocation7], %s952_s6 }
  0x2e   : > { %1129 = dma.done.wait (%p1223_p6), %s153_s7, 1024  }
  0x2f   : > { %1131 = vsyncadd (%p1223_p6), %s153_s7, 4294966272 }
  0x30   : > { %162 = sfence }
  0x31   : > { %v210_v0 = vld [vmem:[%s156_s28 + $0x10] sm:$0xff]  ;;  %v208_v1 = vld [vmem:[%s156_s28] sm:$0xff]  ;;  %s1155_s23 = smov 2   ;;  %v211_v3 = vld [vmem:[%s156_s28 + $0x18] sm:$0xff]  ;;  %vm190_vm0 = vcmask 15360   ;;  %v1156_v8 = vmov 0.0  }
  0x32   : > { %228 = vrot.lane.b32.xlu1 %v210_v0, %s1155_s23  ;;  %224 = vrot.lane.b32.xlu0 %v208_v1, %s1155_s23  ;;  %v212_v2 = vld [vmem:[%s156_s28 + $0x20] sm:$0xff]  ;;  %v209_v4 = vld [vmem:[%s156_s28 + $0x8] sm:$0xff]  ;;  %193 = vst.msk [vmem:[#allocation2 + $0x1a] sm:$0xff] %vm190_vm0, %v1156_v8  ;;  %vm199_vm1 = vcmask 162960   ;;  %vm181_vm2 = vcmask 156672   ;;  %vm248_vm3 = vcmask 146448  }
  0x33   : > { %232 = vrot.lane.b32.xlu2 %v212_v2, %s1155_s23  ;;  %v213_v5 = vld [vmem:[%s156_s28 + $0x28] sm:$0xff]  ;;  %v214_v6 = vld [vmem:[%s156_s28 + $0x30] sm:$0xff]  ;;  %v215_v7 = vld [vmem:[%s156_s28 + $0x38] sm:$0xff]  ;;  %202 = vst.msk [vmem:[#allocation2 + $0x1a] sm:$0xff] %vm199_vm1, %v1156_v8  ;;  %s954_s20 = sld [smem:[#allocation3 + $0x1]]  ;;  %s1157_s5 = smov 127  }
  0x34   : > { %191 = vst.msk [vmem:[#allocation2 + $0x2] sm:$0xff] %vm190_vm0, %v1156_v8  ;;  %s955_s8 = sld [smem:[#allocation3 + $0x2]]  ;;  %s1158_s14 = smov 126   ;;  %vm611_vm4 = vcmask 1046528   ;;  %vm672_vm5 = vcmask 1045504   ;;  %vm733_vm6 = vcmask 1044480  }
  0x35   : > { %192 = vst.msk [vmem:[#allocation2 + $0xa] sm:$0xff] %vm190_vm0, %v1156_v8  ;;  %s956_s16 = sld [smem:[#allocation3 + $0x3]]  ;;  %s1159_s17 = smov 125   ;;  %vm794_vm7 = vcmask 1043456   ;;  %vm831_vm8 = vcmask 130048  }
  0x36   : > { %194 = vst.msk [vmem:[#allocation2 + $0x22] sm:$0xff] %vm190_vm0, %v1156_v8  ;;  %s269_s19 = sld [smem:[#allocation3]]  ;;  %s1160_s25 = smov 124  }
  0x37   : > { %195 = vst.msk [vmem:[#allocation2 + $0x32] sm:$0xff] %vm190_vm0, %v1156_v8  ;;  %s957_s24 = sld [smem:[#allocation3 + $0x4]]  ;;  %s1621_s26 = scalar_lea.vmem [#allocation8], %s952_s6 }
  0x38   : > { %196 = vst.msk [vmem:[#allocation2 + $0x3a] sm:$0xff] %vm190_vm0, %v1156_v8  ;;  %s967_s29 = sshll.u32 %s1199_s13, 6  ;;  %s854_s3 = sshll.u32 %s1621_s26, 4  ;;  %s855_s3 = int_to_ptr.vmem [resolvable:$true] %s854_s3 }
  0x39   : > { %197 = vst.msk [vmem:[#allocation2 + $0x4a] sm:$0xff] %vm190_vm0, %v1156_v8  ;;  %v1301_v13 = vstv %s954_s20  ;;  %s853_s27 = scalar_lea.hbm %s1745_s2, %s967_s29  ;;  %s841_s7 = scalar_lea.sflag [#allocation5], %s1279_s4 }
  0x3a   : > { %230 = vrot.lane.b32.xlu1 %v211_v3, %s1155_s23  ;;  %226 = vrot.lane.b32.xlu0 %v209_v4, %s1155_s23  ;;  %198 = vst.msk [vmem:[#allocation2 + $0x52] sm:$0xff] %vm190_vm0, %v1156_v8  ;;  %v1365_v42 = vstv %s955_s8  ;;  %s856_s6 = sshll.u32 %s853_s27, 4  ;;  %s1100_s8 = scalar_lea.hbm %s1745_s2, 128  ;;  %s857_s6 = int_to_ptr.hbm [resolvable:$true] %s856_s6 }
  0x3b   : > { %234 = vrot.lane.b32.xlu2 %v213_v5, %s1155_s23  ;;  %200 = vst.msk [vmem:[#allocation2 + $0x2] sm:$0xff] %vm199_vm1, %v1156_v8  ;;  %v1389_v53 = vstv %s956_s16  ;;  %s1094_s28 = sshra.s32 %s857_s6, 4  ;;  %s1095_s28 = int_to_ptr.hbm [resolvable:$true] %s1094_s28 }
  0x3c   : > { %201 = vst.msk [vmem:[#allocation2 + $0xa] sm:$0xff] %vm199_vm1, %v1156_v8  ;;  %v1420_v1 = vstv %s269_s19  ;;  %p1101_p0 = scmp.lt.s32.totalorder %s1095_s28, %s1745_s2 }
  0x3d   : > { %203 = vst.msk [vmem:[#allocation2 + $0x22] sm:$0xff] %vm199_vm1, %v1156_v8 }
  0x3e   : > { %204 = vst.msk [vmem:[#allocation2 + $0x32] sm:$0xff] %vm199_vm1, %v1156_v8 }
  0x3f   : > { %205 = vst.msk [vmem:[#allocation2 + $0x3a] sm:$0xff] %vm199_vm1, %v1156_v8 }
  0x40   : > { %206 = vst.msk [vmem:[#allocation2 + $0x4a] sm:$0xff] %vm199_vm1, %v1156_v8 }
  0x41   : > { %207 = vst.msk [vmem:[#allocation2 + $0x52] sm:$0xff] %vm199_vm1, %v1156_v8 }
  0x42   : > { %236 = vrot.lane.b32.xlu0 %v214_v6, %s1155_s23  ;;  %238 = vrot.lane.b32.xlu1 %v215_v7, %s1155_s23  ;;  %182 = vst.msk [vmem:[#allocation2] sm:$0x3] %vm181_vm2, %v1156_v8  ;;  %v1431_v6 = vstv %s957_s24  ;;  %s1096_s23 = scalar_lea.hbm %s1095_s28, 64 }
  0x43   : > { %183 = vst.msk [vmem:[#allocation2 + $0x18] sm:$0x3] %vm181_vm2, %v1156_v8  ;;  %p1097_p4 = scmp.ne.s32.totalorder %s1095_s28, %s1096_s23  ;;  %p1102_p3 = scmp.lt.s32.totalorder %s1100_s8, %s1096_s23 }
  0x44   : > { %184 = vst.msk [vmem:[#allocation2 + $0x30] sm:$0x3] %vm181_vm2, %v1156_v8 }
  0x45   : > { %185 = vst.msk [vmem:[#allocation2 + $0x48] sm:$0x3] %vm181_vm2, %v1156_v8  ;;  %p1098_p6 = pnand %p1097_p4, %p1230_p11  ;;  %p1103_p5 = por %p1102_p3, %p1101_p0 }
  0x46   : > { %186 = vst.msk [vmem:[#allocation2 + $0x12] sm:$0x3] %vm181_vm2, %v1156_v8 }
  0x47   : > { %187 = vst.msk [vmem:[#allocation2 + $0x2a] sm:$0x3] %vm181_vm2, %v1156_v8  ;;  %p1099_p13 = pneg %p1098_p6 }
  0x48   : > { %188 = vst.msk [vmem:[#allocation2 + $0x42] sm:$0x3] %vm181_vm2, %v1156_v8 }
  0x49   : > { %189 = vst.msk [vmem:[#allocation2 + $0x5a] sm:$0x3] %vm181_vm2, %v1156_v8  ;;  %p1104_p8 = pnand %p1103_p5, %p1099_p13 }
  0x8d   : > { %v233_v9 = vpop.permute.xlu2 %232 }
  0x8e   : > { %253 = vst.msk [vmem:[#allocation2 + $0x32] sm:$0xff] %vm248_vm3, %v233_v9 }
  0x95   : > { %v235_v10 = vpop.permute.xlu2 %234  ;;  %v1329_v27 = vld [vmem:[#allocation2 + $0x30] sm:$0xff] }
  0x96   : > { %254 = vst.msk [vmem:[#allocation2 + $0x3a] sm:$0xff] %vm248_vm3, %v235_v10  ;;  %v291_v30 = vmul.f32 %v1301_v13, %v1329_v27  ;;  %v365_v49 = vmul.f32 %v1365_v42, %v1329_v27  ;;  %v439_v62 = vmul.f32 %v1389_v53, %v1329_v27 }
  0x9d   : > { %v1342_v32 = vld [vmem:[#allocation2 + $0x40] sm:$0xf]  ;;  %v1346_v34 = vld [vmem:[#allocation2 + $0x38] sm:$0xff] }
  0x9e   : > { %v293_v35 = vmul.f32 %v1301_v13, %v1342_v32  ;;  %v292_v37 = vmul.f32 %v1301_v13, %v1346_v34  ;;  %v366_v50 = vmul.f32 %v1365_v42, %v1346_v34  ;;  %v367_v51 = vmul.f32 %v1365_v42, %v1342_v32 }
  0x9f   : > { %v440_v63 = vmul.f32 %v1389_v53, %v1346_v34  ;;  %v441_v0 = vmul.f32 %v1389_v53, %v1342_v32 }
  0xa4   : > { %v229_v11 = vpop.permute.xlu1 %228  ;;  %v225_v12 = vpop.permute.xlu0 %224 }
  0xa5   : > { %251 = vst.msk [vmem:[#allocation2 + $0x1a] sm:$0xff] %vm248_vm3, %v229_v11 }
  0xa6   : > { %249 = vst.msk [vmem:[#allocation2 + $0x2] sm:$0xff] %vm248_vm3, %v225_v12 }
  0xac   : > { %v231_v14 = vpop.permute.xlu1 %230  ;;  %v227_v15 = vpop.permute.xlu0 %226  ;;  %v1310_v18 = vld [vmem:[#allocation2 + $0x18] sm:$0xff] }
  0xad   : > { %252 = vst.msk [vmem:[#allocation2 + $0x22] sm:$0xff] %vm248_vm3, %v231_v14  ;;  %v1304_v16 = vld [vmem:[#allocation2] sm:$0xff]  ;;  %v288_v23 = vmul.f32 %v1301_v13, %v1310_v18  ;;  %v362_v46 = vmul.f32 %v1365_v42, %v1310_v18  ;;  %v436_v59 = vmul.f32 %v1389_v53, %v1310_v18  ;;  %v274_v10 = vmul.f32 %v1420_v1, %v1310_v18 }
  0xae   : > { %250 = vst.msk [vmem:[#allocation2 + $0xa] sm:$0xff] %vm248_vm3, %v227_v15  ;;  %v285_v17 = vmul.f32 %v1301_v13, %v1304_v16  ;;  %v359_v43 = vmul.f32 %v1365_v42, %v1304_v16  ;;  %v433_v56 = vmul.f32 %v1389_v53, %v1304_v16  ;;  %v271_v3 = vmul.f32 %v1420_v1, %v1304_v16 }
  0xaf   : > { %v507_v9 = vmul.f32 %v1431_v6, %v1304_v16  ;;  %v510_v16 = vmul.f32 %v1431_v6, %v1310_v18  ;;  %v513_v18 = vmul.f32 %v1431_v6, %v1329_v27 }
  0xb0   : > { %309 = vrot.lane.b32.xlu2 %v285_v17, %s1157_s5  ;;  %v277_v17 = vmul.f32 %v1420_v1, %v1329_v27 }
  0xb4   : > { %v237_v19 = vpop.permute.xlu0 %236  ;;  %v239_v20 = vpop.permute.xlu1 %238  ;;  %v1327_v26 = vld [vmem:[#allocation2 + $0x28] sm:$0xf]  ;;  %v1331_v28 = vld [vmem:[#allocation2 + $0x20] sm:$0xff] }
  0xb5   : > { %v1312_v21 = vld [vmem:[#allocation2 + $0x8] sm:$0xff]  ;;  %v1314_v22 = vld [vmem:[#allocation2 + $0x10] sm:$0xf]  ;;  %255 = vst.msk [vmem:[#allocation2 + $0x4a] sm:$0xff] %vm248_vm3, %v237_v19  ;;  %v290_v29 = vmul.f32 %v1301_v13, %v1327_v26  ;;  %v289_v31 = vmul.f32 %v1301_v13, %v1331_v28  ;;  %v363_v47 = vmul.f32 %v1365_v42, %v1331_v28  ;;  %v364_v48 = vmul.f32 %v1365_v42, %v1327_v26 }
  0xb6   : > { %v286_v24 = vmul.f32 %v1301_v13, %v1312_v21  ;;  %v287_v25 = vmul.f32 %v1301_v13, %v1314_v22  ;;  %256 = vst.msk [vmem:[#allocation2 + $0x52] sm:$0xff] %vm248_vm3, %v239_v20  ;;  %v360_v44 = vmul.f32 %v1365_v42, %v1312_v21  ;;  %v361_v45 = vmul.f32 %v1365_v42, %v1314_v22 }
  0xb7   : > { %v434_v57 = vmul.f32 %v1389_v53, %v1312_v21  ;;  %v435_v58 = vmul.f32 %v1389_v53, %v1314_v22  ;;  %v437_v60 = vmul.f32 %v1389_v53, %v1331_v28  ;;  %v438_v61 = vmul.f32 %v1389_v53, %v1327_v26 }
  0xb8   : > { %311 = vrot.lane.b32.xlu0 %v286_v24, %s1157_s5  ;;  %313 = vrot.lane.b32.xlu1 %v287_v25, %s1157_s5  ;;  %v508_v14 = vmul.f32 %v1431_v6, %v1312_v21  ;;  %v509_v15 = vmul.f32 %v1431_v6, %v1314_v22  ;;  %v512_v24 = vmul.f32 %v1431_v6, %v1327_v26 }
  0xb9   : > { %315 = vrot.lane.b32.xlu2 %v288_v23, %s1157_s5  ;;  %v511_v23 = vmul.f32 %v1431_v6, %v1331_v28 }
  0xbc   : > { %v1344_v33 = vld [vmem:[#allocation2 + $0x48] sm:$0xff] }
  0xbd   : > { %v294_v36 = vmul.f32 %v1301_v13, %v1344_v33  ;;  %v1357_v38 = vld [vmem:[#allocation2 + $0x50] sm:$0xff]  ;;  %v1359_v39 = vld [vmem:[#allocation2 + $0x58] sm:$0xf]  ;;  %v368_v52 = vmul.f32 %v1365_v42, %v1344_v33  ;;  %v442_v2 = vmul.f32 %v1389_v53, %v1344_v33  ;;  %v280_v25 = vmul.f32 %v1420_v1, %v1344_v33 }
  0xbe   : > { %v295_v40 = vmul.f32 %v1301_v13, %v1357_v38  ;;  %v296_v41 = vmul.f32 %v1301_v13, %v1359_v39  ;;  %v369_v54 = vmul.f32 %v1365_v42, %v1357_v38  ;;  %v370_v55 = vmul.f32 %v1365_v42, %v1359_v39 }
  0xbf   : > { %v443_v7 = vmul.f32 %v1389_v53, %v1357_v38  ;;  %v444_v8 = vmul.f32 %v1389_v53, %v1359_v39  ;;  %v516_v27 = vmul.f32 %v1431_v6, %v1344_v33  ;;  %v517_v33 = vmul.f32 %v1431_v6, %v1357_v38 }
  0xc0   : > { %317 = vrot.lane.b32.xlu0 %v289_v31, %s1157_s5  ;;  %319 = vrot.lane.b32.xlu1 %v290_v29, %s1157_s5  ;;  %v514_v31 = vmul.f32 %v1431_v6, %v1346_v34 }
  0xc1   : > { %321 = vrot.lane.b32.xlu2 %v291_v30, %s1157_s5 }
  0xc8   : > { %323 = vrot.lane.b32.xlu0 %v292_v37, %s1157_s5  ;;  %325 = vrot.lane.b32.xlu1 %v293_v35, %s1157_s5  ;;  %v515_v35 = vmul.f32 %v1431_v6, %v1342_v32  ;;  %v273_v37 = vmul.f32 %v1420_v1, %v1314_v22  ;;  %v276_v22 = vmul.f32 %v1420_v1, %v1327_v26 }
  0xc9   : > { %327 = vrot.lane.b32.xlu2 %v294_v36, %s1157_s5  ;;  %v272_v36 = vmul.f32 %v1420_v1, %v1312_v21  ;;  %v275_v21 = vmul.f32 %v1420_v1, %v1331_v28  ;;  %v281_v28 = vmul.f32 %v1420_v1, %v1357_v38  ;;  %v282_v26 = vmul.f32 %v1420_v1, %v1359_v39 }
  0xd0   : > { %329 = vrot.lane.b32.xlu0 %v295_v40, %s1157_s5  ;;  %331 = vrot.lane.b32.xlu1 %v296_v41, %s1157_s5 }
  0xd1   : > { %383 = vrot.lane.b32.xlu2 %v359_v43, %s1158_s14 }
  0xd8   : > { %385 = vrot.lane.b32.xlu0 %v360_v44, %s1158_s14  ;;  %387 = vrot.lane.b32.xlu1 %v361_v45, %s1158_s14 }
  0xd9   : > { %389 = vrot.lane.b32.xlu2 %v362_v46, %s1158_s14  ;;  %v518_v46 = vmul.f32 %v1431_v6, %v1359_v39 }
  0xe0   : > { %391 = vrot.lane.b32.xlu0 %v363_v47, %s1158_s14  ;;  %393 = vrot.lane.b32.xlu1 %v364_v48, %s1158_s14 }
  0xe1   : > { %395 = vrot.lane.b32.xlu2 %v365_v49, %s1158_s14 }
  0xe8   : > { %397 = vrot.lane.b32.xlu0 %v366_v50, %s1158_s14  ;;  %399 = vrot.lane.b32.xlu1 %v367_v51, %s1158_s14 }
  0xe9   : > { %401 = vrot.lane.b32.xlu2 %v368_v52, %s1158_s14  ;;  %v278_v52 = vmul.f32 %v1420_v1, %v1346_v34 }
  0xf0   : > { %403 = vrot.lane.b32.xlu0 %v369_v54, %s1158_s14  ;;  %405 = vrot.lane.b32.xlu1 %v370_v55, %s1158_s14  ;;  %v279_v54 = vmul.f32 %v1420_v1, %v1342_v32 }
  0xf1   : > { %457 = vrot.lane.b32.xlu2 %v433_v56, %s1159_s17 }
  0xf8   : > { %459 = vrot.lane.b32.xlu0 %v434_v57, %s1159_s17  ;;  %461 = vrot.lane.b32.xlu1 %v435_v58, %s1159_s17 }
  0xf9   : > { %463 = vrot.lane.b32.xlu2 %v436_v59, %s1159_s17 }
 0x100   : > { %465 = vrot.lane.b32.xlu0 %v437_v60, %s1159_s17  ;;  %467 = vrot.lane.b32.xlu1 %v438_v61, %s1159_s17 }
 0x101   : > { %469 = vrot.lane.b32.xlu2 %v439_v62, %s1159_s17 }
 0x108   : > { %471 = vrot.lane.b32.xlu0 %v440_v63, %s1159_s17  ;;  %473 = vrot.lane.b32.xlu1 %v441_v0, %s1159_s17 }
 0x109   : > { %475 = vrot.lane.b32.xlu2 %v442_v2, %s1159_s17 }
 0x10a   : > { %v310_v4 = vpop.permute.xlu2 %309 }
 0x10b   : > { %v1429_v5 = vadd.f32 %v310_v4, %v271_v3 }
 0x110   : > { %477 = vrot.lane.b32.xlu0 %v443_v7, %s1159_s17  ;;  %479 = vrot.lane.b32.xlu1 %v444_v8, %s1159_s17 }
 0x111   : > { %531 = vrot.lane.b32.xlu2 %v507_v9, %s1160_s25 }
 0x113   : > { %v316_v11 = vpop.permute.xlu2 %315 }
 0x114   : > { %v1444_v12 = vadd.f32 %v316_v11, %v274_v10 }
 0x118   : > { %533 = vrot.lane.b32.xlu0 %v508_v14, %s1160_s25  ;;  %535 = vrot.lane.b32.xlu1 %v509_v15, %s1160_s25 }
 0x119   : > { %537 = vrot.lane.b32.xlu2 %v510_v16, %s1160_s25 }
 0x11b   : > { %v322_v19 = vpop.permute.xlu2 %321 }
 0x11c   : > { %v1457_v20 = vadd.f32 %v322_v19, %v277_v17 }
 0x120   : > { %539 = vrot.lane.b32.xlu0 %v511_v23, %s1160_s25  ;;  %541 = vrot.lane.b32.xlu1 %v512_v24, %s1160_s25 }
 0x121   : > { %543 = vrot.lane.b32.xlu2 %v513_v18, %s1160_s25 }
 0x123   : > { %v328_v29 = vpop.permute.xlu2 %327 }
 0x124   : > { %v1470_v30 = vadd.f32 %v328_v29, %v280_v25 }
 0x128   : > { %545 = vrot.lane.b32.xlu0 %v514_v31, %s1160_s25  ;;  %547 = vrot.lane.b32.xlu1 %v515_v35, %s1160_s25 }
 0x129   : > { %549 = vrot.lane.b32.xlu2 %v516_v27, %s1160_s25 }
 0x12a   : > { %v312_v40 = vpop.permute.xlu0 %311  ;;  %v314_v41 = vpop.permute.xlu1 %313 }
 0x12b   : > { %v346_v43 = vadd.f32 %v312_v40, %v272_v36  ;;  %v347_v44 = vadd.f32 %v314_v41, %v273_v37  ;;  %v384_v45 = vpop.permute.xlu2 %383 }
 0x12c   : > { %v419_v24 = vadd.f32 %v384_v45, %v1429_v5 }
 0x130   : > { %551 = vrot.lane.b32.xlu0 %v517_v33, %s1160_s25  ;;  %553 = vrot.lane.b32.xlu1 %v518_v46, %s1160_s25 }
 0x132   : > { %v318_v47 = vpop.permute.xlu0 %317  ;;  %v320_v48 = vpop.permute.xlu1 %319 }
 0x133   : > { %v349_v49 = vadd.f32 %v318_v47, %v275_v21  ;;  %v350_v50 = vadd.f32 %v320_v48, %v276_v22  ;;  %v390_v51 = vpop.permute.xlu2 %389 }
 0x134   : > { %v422_v35 = vadd.f32 %v390_v51, %v1444_v12 }
 0x13a   : > { %v324_v55 = vpop.permute.xlu0 %323  ;;  %v326_v56 = vpop.permute.xlu1 %325 }
 0x13b   : > { %v352_v57 = vadd.f32 %v324_v55, %v278_v52  ;;  %v353_v58 = vadd.f32 %v326_v56, %v279_v54  ;;  %v396_v59 = vpop.permute.xlu2 %395 }
 0x13c   : > { %v425_v36 = vadd.f32 %v396_v59, %v1457_v20 }
 0x142   : > { %v330_v60 = vpop.permute.xlu0 %329  ;;  %v332_v61 = vpop.permute.xlu1 %331 }
 0x143   : > { %v355_v62 = vadd.f32 %v330_v60, %v281_v28  ;;  %v356_v63 = vadd.f32 %v332_v61, %v282_v26  ;;  %v402_v0 = vpop.permute.xlu2 %401 }
 0x144   : > { %v428_v40 = vadd.f32 %v402_v0, %v1470_v30 }
 0x14a   : > { %v386_v34 = vpop.permute.xlu0 %385  ;;  %v388_v2 = vpop.permute.xlu1 %387 }
 0x14b   : > { %v458_v3 = vpop.permute.xlu2 %457  ;;  %v420_v41 = vadd.f32 %v386_v34, %v346_v43  ;;  %v421_v33 = vadd.f32 %v388_v2, %v347_v44 }
 0x14c   : > { %v493_v29 = vadd.f32 %v458_v3, %v419_v24 }
 0x152   : > { %v392_v32 = vpop.permute.xlu0 %391  ;;  %v394_v4 = vpop.permute.xlu1 %393 }
 0x153   : > { %v464_v7 = vpop.permute.xlu2 %463  ;;  %v423_v46 = vadd.f32 %v392_v32, %v349_v49  ;;  %v424_v21 = vadd.f32 %v394_v4, %v350_v50 }
 0x154   : > { %v496_v37 = vadd.f32 %v464_v7, %v422_v35 }
 0x15a   : > { %v398_v8 = vpop.permute.xlu0 %397  ;;  %v400_v9 = vpop.permute.xlu1 %399 }
 0x15b   : > { %v470_v10 = vpop.permute.xlu2 %469  ;;  %v426_v48 = vadd.f32 %v398_v8, %v352_v57  ;;  %v427_v20 = vadd.f32 %v400_v9, %v353_v58 }
 0x15c   : > { %v499_v22 = vadd.f32 %v470_v10, %v425_v36 }
 0x162   : > { %v404_v11 = vpop.permute.xlu0 %403  ;;  %v406_v14 = vpop.permute.xlu1 %405 }
 0x163   : > { %v476_v38 = vpop.permute.xlu2 %475  ;;  %v429_v51 = vadd.f32 %v404_v11, %v355_v62  ;;  %v430_v52 = vadd.f32 %v406_v14, %v356_v63 }
 0x164   : > { %v502_v49 = vadd.f32 %v476_v38, %v428_v40 }
 0x16a   : > { %v460_v15 = vpop.permute.xlu0 %459  ;;  %v462_v16 = vpop.permute.xlu1 %461 }
 0x16b   : > { %v532_v39 = vpop.permute.xlu2 %531  ;;  %v494_v50 = vadd.f32 %v460_v15, %v420_v41  ;;  %v495_v54 = vadd.f32 %v462_v16, %v421_v33 }
 0x16c   : > { %v567_v27 = vadd.f32 %v532_v39, %v493_v29 }
 0x16e   : > { %v1508_v5 = vmul.f32 %v567_v27, %v1301_v13  ;;  %v1511_v45 = vmul.f32 %v567_v27, %v1365_v42  ;;  %v1514_v12 = vmul.f32 %v567_v27, %v1389_v53  ;;  %v1517_v55 = vmul.f32 %v567_v27, %v1431_v6 }
 0x16f   : > { %v1520_v56 = vmul.f32 %v567_v27, %v1420_v1 }
 0x170   : > { %v612_v28 = vrot.slane %v1508_v5, 1  ;;  %v673_v26 = vrot.slane %v1511_v45, 2  ;;  %v734_v60 = vrot.slane %v1514_v12, 3  ;;  %v795_v3 = vrot.slane %v1517_v55, 4 }
 0x172   : > { %v466_v17 = vpop.permute.xlu0 %465  ;;  %v468_v19 = vpop.permute.xlu1 %467 }
 0x173   : > { %v538_v23 = vpop.permute.xlu2 %537  ;;  %v497_v32 = vadd.f32 %v466_v17, %v423_v46  ;;  %v498_v4 = vadd.f32 %v468_v19, %v424_v21 }
 0x174   : > { %v570_v47 = vadd.f32 %v538_v23, %v496_v37 }
 0x176   : > { %v1523_v57 = vmul.f32 %v570_v47, %v1301_v13  ;;  %v1526_v59 = vmul.f32 %v570_v47, %v1365_v42  ;;  %v1529_v58 = vmul.f32 %v570_v47, %v1389_v53  ;;  %v1535_v61 = vmul.f32 %v570_v47, %v1431_v6 }
 0x177   : > { %v1551_v7 = vmul.f32 %v570_v47, %v1420_v1 }
 0x178   : > { %v617_v8 = vrot.slane %v1523_v57, 1  ;;  %v678_v9 = vrot.slane %v1526_v59, 2  ;;  %v739_v10 = vrot.slane %v1529_v58, 3  ;;  %v800_v14 = vrot.slane %v1535_v61, 4 }
 0x17a   : > { %v472_v18 = vpop.permute.xlu0 %471  ;;  %v474_v25 = vpop.permute.xlu1 %473 }
 0x17b   : > { %v544_v31 = vpop.permute.xlu2 %543  ;;  %v1557_v38 = vadd.f32 %v472_v18, %v426_v48  ;;  %v1559_v15 = vadd.f32 %v474_v25, %v427_v20 }
 0x17c   : > { %v573_v30 = vadd.f32 %v544_v31, %v499_v22 }
 0x17e   : > { %v1538_v63 = vmul.f32 %v573_v30, %v1301_v13  ;;  %v1541_v0 = vmul.f32 %v573_v30, %v1365_v42  ;;  %v1544_v34 = vmul.f32 %v573_v30, %v1389_v53  ;;  %v1547_v2 = vmul.f32 %v573_v30, %v1431_v6 }
 0x17f   : > { %v1562_v16 = vmul.f32 %v573_v30, %v1420_v1 }
 0x180   : > { %v622_v39 = vrot.slane %v1538_v63, 1  ;;  %v683_v17 = vrot.slane %v1541_v0, 2  ;;  %v744_v19 = vrot.slane %v1544_v34, 3  ;;  %v805_v23 = vrot.slane %v1547_v2, 4 }
 0x182   : > { %v478_v43 = vpop.permute.xlu0 %477  ;;  %v480_v44 = vpop.permute.xlu1 %479 }
 0x183   : > { %v550_v62 = vpop.permute.xlu2 %549  ;;  %v1568_v31 = vadd.f32 %v478_v43, %v429_v51  ;;  %v1570_v35 = vadd.f32 %v480_v44, %v430_v52 }
 0x184   : > { %v576_v11 = vadd.f32 %v550_v62, %v502_v49 }
 0x186   : > { %v1573_v27 = vmul.f32 %v576_v11, %v1420_v1  ;;  %v1576_v36 = vmul.f32 %v576_v11, %v1301_v13  ;;  %v1579_v37 = vmul.f32 %v576_v11, %v1365_v42  ;;  %v1582_v40 = vmul.f32 %v576_v11, %v1389_v53 }
 0x188   : > { %v688_v58 = vrot.slane %v1579_v37, 2 }
 0x18a   : > { %v534_v24 = vpop.permute.xlu0 %533  ;;  %v536_v29 = vpop.permute.xlu1 %535 }
 0x18b   : > { %v568_v18 = vadd.f32 %v534_v24, %v494_v50  ;;  %v569_v25 = vadd.f32 %v536_v29, %v495_v54 }
 0x18d   : > { %v580_v41 = vmul.f32 %v568_v18, %v1420_v1  ;;  %v588_v33 = vmul.f32 %v568_v18, %v1301_v13  ;;  %v649_v46 = vmul.f32 %v568_v18, %v1365_v42  ;;  %v710_v21 = vmul.f32 %v568_v18, %v1389_v53 }
 0x18e   : > { %v771_v22 = vmul.f32 %v568_v18, %v1431_v6  ;;  %v589_v47 = vmul.f32 %v569_v25, %v1301_v13  ;;  %v650_v48 = vmul.f32 %v569_v25, %v1365_v42  ;;  %v711_v5 = vmul.f32 %v569_v25, %v1389_v53 }
 0x18f   : > { %v613_v45 = vrot.slane %v588_v33, 1  ;;  %v674_v12 = vrot.slane %v649_v46, 2  ;;  %v735_v20 = vrot.slane %v710_v21, 3  ;;  %v772_v51 = vmul.f32 %v569_v25, %v1431_v6 }
 0x190   : > { %v796_v52 = vrot.slane %v771_v22, 4  ;;  %v615_v30 = vrot.slane %v589_v47, 1  ;;  %v676_v43 = vrot.slane %v650_v48, 2  ;;  %v737_v44 = vrot.slane %v711_v5, 3 }
 0x191   : > { %v614_v49 = vsel %vm611_vm4, %v612_v28, %v613_v45  ;;  %v675_v50 = vsel %vm672_vm5, %v673_v26, %v674_v12  ;;  %v736_v54 = vsel %vm733_vm6, %v734_v60, %v735_v20  ;;  %v798_v55 = vrot.slane %v772_v51, 4 }
 0x192   : > { %v640_v62 = vadd.f32 %v614_v49, %v1520_v56  ;;  %v797_v24 = vsel %vm794_vm7, %v795_v3, %v796_v52  ;;  %v616_v29 = vsel %vm611_vm4, %v613_v45, %v615_v30  ;;  %v677_v18 = vsel %vm672_vm5, %v674_v12, %v676_v43  ;;  %v540_v25 = vpop.permute.xlu0 %539  ;;  %v542_v33 = vpop.permute.xlu1 %541 }
 0x193   : > { %v641_v46 = vadd.f32 %v616_v29, %v580_v41  ;;  %v738_v21 = vsel %vm733_vm6, %v735_v20, %v737_v44  ;;  %v799_v28 = vsel %vm794_vm7, %v796_v52, %v798_v55  ;;  %v571_v22 = vadd.f32 %v540_v25, %v497_v32 }
 0x194   : > { %v627_v26 = vrot.slane %v1576_v36, 1  ;;  %v1604_v60 = vmul.f32 %v576_v11, %v1431_v6  ;;  %v701_v56 = vadd.f32 %v675_v50, %v640_v62  ;;  %v572_v47 = vadd.f32 %v542_v33, %v498_v4 }
 0x195   : > { %v702_v3 = vadd.f32 %v677_v18, %v641_v46  ;;  %v582_v48 = vmul.f32 %v571_v22, %v1420_v1  ;;  %v591_v5 = vmul.f32 %v571_v22, %v1301_v13  ;;  %v652_v45 = vmul.f32 %v571_v22, %v1365_v42 }
 0x196   : > { %v762_v41 = vadd.f32 %v736_v54, %v701_v56  ;;  %v713_v12 = vmul.f32 %v571_v22, %v1389_v53  ;;  %v774_v32 = vmul.f32 %v571_v22, %v1431_v6  ;;  %v592_v20 = vmul.f32 %v572_v47, %v1301_v13 }
 0x197   : > { %v763_v51 = vadd.f32 %v738_v21, %v702_v3  ;;  %v618_v11 = vrot.slane %v591_v5, 1  ;;  %v679_v52 = vrot.slane %v652_v45, 2  ;;  %v653_v4 = vmul.f32 %v572_v47, %v1365_v42 }
 0x198   : > { %v823_v30 = vadd.f32 %v797_v24, %v762_v41  ;;  %v740_v43 = vrot.slane %v713_v12, 3  ;;  %v801_v44 = vrot.slane %v774_v32, 4  ;;  %v620_v49 = vrot.slane %v592_v20, 1 }
 0x199   : > { %v824_v50 = vadd.f32 %v799_v28, %v763_v51  ;;  %v619_v54 = vsel %vm611_vm4, %v617_v8, %v618_v11  ;;  %v680_v55 = vsel %vm672_vm5, %v678_v9, %v679_v52  ;;  %v681_v62 = vrot.slane %v653_v4, 2 }
 0x19a   : > { %832 = vst.msk [vmem:[%s1621_s26] sm:$0xff] %vm831_vm8, %v823_v30  ;;  %v642_v24 = vadd.f32 %v619_v54, %v1551_v7  ;;  %v741_v57 = vsel %vm733_vm6, %v739_v10, %v740_v43  ;;  %v802_v59 = vsel %vm794_vm7, %v800_v14, %v801_v44  ;;  %v621_v8 = vsel %vm611_vm4, %v618_v11, %v620_v49  ;;  %v546_v9 = vpop.permute.xlu0 %545  ;;  %v548_v29 = vpop.permute.xlu1 %547 }
 0x19b   : > { %833 = vst.msk [vmem:[%s1621_s26 + $0x8] sm:$0xff] %vm831_vm8, %v824_v50  ;;  %v643_v18 = vadd.f32 %v621_v8, %v582_v48  ;;  %v682_v25 = vsel %vm672_vm5, %v679_v52, %v681_v62  ;;  %v714_v33 = vmul.f32 %v572_v47, %v1389_v53  ;;  %v775_v7 = vmul.f32 %v572_v47, %v1431_v6 }
 0x19c   : > { %v749_v10 = vrot.slane %v1582_v40, 3  ;;  %v703_v61 = vadd.f32 %v680_v55, %v642_v24  ;;  %v574_v14 = vadd.f32 %v546_v9, %v1557_v38  ;;  %v575_v22 = vadd.f32 %v548_v29, %v1559_v15 }
 0x19d   : > { %v704_v46 = vadd.f32 %v682_v25, %v643_v18  ;;  %v742_v21 = vrot.slane %v714_v33, 3  ;;  %v803_v28 = vrot.slane %v775_v7, 4 }
 0x19e   : > { %v764_v56 = vadd.f32 %v741_v57, %v703_v61  ;;  %v584_v3 = vmul.f32 %v574_v14, %v1420_v1  ;;  %v594_v48 = vmul.f32 %v574_v14, %v1301_v13  ;;  %v655_v47 = vmul.f32 %v574_v14, %v1365_v42 }
 0x19f   : > { %v743_v5 = vsel %vm733_vm6, %v740_v43, %v742_v21  ;;  %v804_v45 = vsel %vm794_vm7, %v801_v44, %v803_v28  ;;  %v716_v41 = vmul.f32 %v574_v14, %v1389_v53  ;;  %v777_v38 = vmul.f32 %v574_v14, %v1431_v6 }
 0x1a0   : > { %v825_v12 = vadd.f32 %v802_v59, %v764_v56  ;;  %v765_v32 = vadd.f32 %v743_v5, %v704_v46  ;;  %v623_v20 = vrot.slane %v594_v48, 1  ;;  %v684_v15 = vrot.slane %v655_v47, 2 }
 0x1a1   : > { %v745_v51 = vrot.slane %v716_v41, 3  ;;  %v806_v11 = vrot.slane %v777_v38, 4  ;;  %v595_v52 = vmul.f32 %v575_v22, %v1301_v13  ;;  %v656_v4 = vmul.f32 %v575_v22, %v1365_v42 }
 0x1a2   : > { %834 = vst.msk [vmem:[%s1621_s26 + $0x10] sm:$0xff] %vm831_vm8, %v825_v12  ;;  %v826_v30 = vadd.f32 %v804_v45, %v765_v32  ;;  %v624_v43 = vsel %vm611_vm4, %v622_v39, %v623_v20  ;;  %v685_v44 = vsel %vm672_vm5, %v683_v17, %v684_v15  ;;  %v717_v49 = vmul.f32 %v575_v22, %v1389_v53  ;;  %v552_v50 = vpop.permute.xlu0 %551  ;;  %v554_v54 = vpop.permute.xlu1 %553 }
 0x1a3   : > { %v644_v55 = vadd.f32 %v624_v43, %v1562_v16  ;;  %v746_v62 = vsel %vm733_vm6, %v744_v19, %v745_v51  ;;  %v807_v63 = vsel %vm794_vm7, %v805_v23, %v806_v11  ;;  %v625_v24 = vrot.slane %v595_v52, 1 }
 0x1a4   : > { %835 = vst.msk [vmem:[%s1621_s26 + $0x18] sm:$0xff] %vm831_vm8, %v826_v30  ;;  %v686_v0 = vrot.slane %v656_v4, 2  ;;  %v747_v39 = vrot.slane %v717_v49, 3  ;;  %v778_v17 = vmul.f32 %v575_v22, %v1431_v6  ;;  %v577_v57 = vadd.f32 %v552_v50, %v1568_v31 }
 0x1a5   : > { %v810_v59 = vrot.slane %v1604_v60, 4  ;;  %v705_v16 = vadd.f32 %v685_v44, %v644_v55  ;;  %v626_v34 = vsel %vm611_vm4, %v623_v20, %v625_v24  ;;  %v578_v19 = vadd.f32 %v554_v54, %v1570_v35 }
 0x1a6   : > { %v645_v8 = vadd.f32 %v626_v34, %v584_v3  ;;  %v687_v2 = vsel %vm672_vm5, %v684_v15, %v686_v0  ;;  %v748_v23 = vsel %vm733_vm6, %v745_v51, %v747_v39  ;;  %v808_v9 = vrot.slane %v778_v17, 4 }
 0x1a7   : > { %v766_v29 = vadd.f32 %v746_v62, %v705_v16  ;;  %v586_v18 = vmul.f32 %v577_v57, %v1420_v1  ;;  %v597_v31 = vmul.f32 %v577_v57, %v1301_v13  ;;  %v658_v60 = vmul.f32 %v577_v57, %v1365_v42 }
 0x1a8   : > { %v706_v25 = vadd.f32 %v687_v2, %v645_v8  ;;  %v809_v33 = vsel %vm794_vm7, %v806_v11, %v808_v9  ;;  %v719_v35 = vmul.f32 %v577_v57, %v1389_v53  ;;  %v780_v7 = vmul.f32 %v577_v57, %v1431_v6 }
 0x1a9   : > { %v827_v61 = vadd.f32 %v807_v63, %v766_v29  ;;  %v628_v14 = vrot.slane %v597_v31, 1  ;;  %v689_v46 = vrot.slane %v658_v60, 2  ;;  %v598_v21 = vmul.f32 %v578_v19, %v1301_v13 }
 0x1aa   : > { %v767_v28 = vadd.f32 %v748_v23, %v706_v25  ;;  %v750_v22 = vrot.slane %v719_v35, 3  ;;  %v811_v1 = vrot.slane %v780_v7, 4  ;;  %v659_v56 = vmul.f32 %v578_v19, %v1365_v42 }
 0x1ab   : > { %836 = vst.msk [vmem:[%s1621_s26 + $0x20] sm:$0xff] %vm831_vm8, %v827_v61  ;;  %v629_v3 = vsel %vm611_vm4, %v627_v26, %v628_v14  ;;  %v690_v48 = vsel %vm672_vm5, %v688_v58, %v689_v46  ;;  %v630_v47 = vrot.slane %v598_v21, 1  ;;  %v720_v13 = vmul.f32 %v578_v19, %v1389_v53 }
 0x1ac   : > { %v828_v5 = vadd.f32 %v809_v33, %v767_v28  ;;  %v646_v45 = vadd.f32 %v629_v3, %v1573_v27  ;;  %v751_v42 = vsel %vm733_vm6, %v749_v10, %v750_v22  ;;  %v812_v41 = vsel %vm794_vm7, %v810_v59, %v811_v1 }
 0x1ad   : > { %v631_v36 = vsel %vm611_vm4, %v628_v14, %v630_v47  ;;  %v691_v26 = vrot.slane %v659_v56, 2  ;;  %v752_v38 = vrot.slane %v720_v13, 3  ;;  %v781_v37 = vmul.f32 %v578_v19, %v1431_v6 }
 0x1ae   : > { %837 = vst.msk [vmem:[%s1621_s26 + $0x28] sm:$0xff] %vm831_vm8, %v828_v5  ;;  %v707_v53 = vadd.f32 %v690_v48, %v646_v45  ;;  %v647_v27 = vadd.f32 %v631_v36, %v586_v18 }
 0x1af   : > { %v692_v40 = vsel %vm672_vm5, %v689_v46, %v691_v26  ;;  %v753_v58 = vsel %vm733_vm6, %v750_v22, %v752_v38  ;;  %v813_v10 = vrot.slane %v781_v37, 4 }
 0x1b0   : > { %v768_v12 = vadd.f32 %v751_v42, %v707_v53  ;;  %v708_v32 = vadd.f32 %v692_v40, %v647_v27 }
 0x1b1   : > { %v814_v6 = vsel %vm794_vm7, %v811_v1, %v813_v10 }
 0x1b2   : > { %v829_v20 = vadd.f32 %v812_v41, %v768_v12  ;;  %v769_v15 = vadd.f32 %v753_v58, %v708_v32 }
 0x1b4   : > { %838 = vst.msk [vmem:[%s1621_s26 + $0x30] sm:$0xff] %vm831_vm8, %v829_v20  ;;  %v830_v51 = vadd.f32 %v814_v6, %v769_v15 }
 0x1b6   : > { %839 = vst.msk [vmem:[%s1621_s26 + $0x38] sm:$0xff] %vm831_vm8, %v830_v51 }
 0x1b7   : > { %1107 = shalt.err (!%p1104_p8)
}
 0x1b8   : > { %s1161_s4 = smov 128   ;;  %s1162_s17 = smov 8  }
 0x1b9   : > { %974 = dma.vmem_to_hbm [thread:$0]  (%p1230_p11), %s855_s3, 1024, %s857_s6, %s841_s7, %s1161_s4, %s1161_s4, %s1162_s17  }
 0x1ba PF: > { %s871_s19 = sand.u32 1, %s1138_s9   ;;  %p1752_p9 = scmp.ge.s32.totalorder %s1150_s12, 2 }
 0x1bb   : > { %s872_s24 = scalar_lea.sflag [#allocation5], %s871_s19 }
 0x1bc   : > { %p985_p10 = pnand %p1752_p9, %p1234_p12 }
 0x1be   : > { %p986_p1 = pneg %p985_p10 }
 0x1c0   : > { %1133 = dma.done.wait (%p986_p1), %s872_s24, 1024  }
 0x1c1   : > { %1135 = vsyncadd (%p986_p1), %s872_s24, 4294966272  ;;  %p16_p2 = scmp.ge.s32.totalorder %s1203_s15, 4   ;;  %s1753_s9 = smov %s1142_s10 }
 0x1c2   : > { %s1754_s10 = smov %s1146_s11  ;;  %s1755_s11 = smov %s1215_s18 }
 0x1c3   : > { %s1756_s12 = smov %s1203_s15  ;;  %18 = sbr.rel (!%p16_p2) target bundleno = 6 (0x6), region = 78 }
 0x1c8   :  { %878 = vsyncpa [#allocation4], 1 }
 0x1c9   :  { %880 = vsyncpa [#allocation4 + $0x1], 1 }
 0x1ca   :  { %881 = vsyncpa [#allocation5], 1 }
 0x1cb   :  { %883 = vsyncpa [#allocation5 + $0x1], 1 }
 0x1cc   :  { %884 = vsyncpa [#allocation6], 1 }
 0x1cd   :  { %886 = vsyncpa [#allocation6 + $0x1], 1 }

</bundles_post_ra>
